<compile_context>
chip_gen: v5e
topology: v5e:2x2
jax: 0.10.0
libtpu: 0.0.40
codegen_flags: <defaults>
</compile_context>

<pallas_src>
import functools

import jax
import jax.numpy as jnp
from jax.experimental import pallas as pl
from jax.experimental.pallas import tpu as pltpu


_VMEM_LIMIT_BYTES = 48 * 1024 * 1024   # < 64 MiB physical on v7x, fine on v5e/v6e
_TILE_BUDGET_BYTES = 28 * 1024 * 1024  # target working set (double buffers incl.)


def _round_up(x, m):
    return ((x + m - 1) // m) * m


def _pick_row_tile(rows_total, per_row_bytes, fixed_bytes=0,
                   budget=_TILE_BUDGET_BYTES, cap=512):
    avail = budget - fixed_bytes
    t = avail // max(per_row_bytes, 1)
    return int(max(1, min(t, rows_total, cap)))


# ----------------------------------------------------------------------------
# Kernels
# ----------------------------------------------------------------------------
def _conv_downsample_kernel(ph_ref, w_ref, b_ref, o_ref, *, wo_pad, compute_dtype):
    """Strided 3x3 conv (stride 2) as 9 tap matmuls on the MXU.

    ph_ref : (1, 1, 4, tHo+1, Wo_pad+1, Cin)  phases (row/col parity) with halo
    w_ref  : (3, 3, Cin, tCout)
    b_ref  : (1, tCout)
    o_ref  : (1, tHo*Wo_pad, tCout)           lane-dense flat output slab
    """
    tho = ph_ref.shape[3] - 1
    cin = ph_ref.shape[5]
    tcout = o_ref.shape[2]

    acc = jnp.zeros((tho * wo_pad, tcout), jnp.float32)
    for kh in range(3):
        for kw in range(3):
            pa, pb = kh % 2, kw % 2          # which parity phase
            dh, dw = kh // 2, kw // 2        # offset within the phase
            patch = ph_ref[0, 0, pa * 2 + pb, pl.ds(dh, tho), pl.ds(dw, wo_pad), :]
            # Wo_pad % 8 == 0 -> this reshape is a layout no-op (no VMEM copy).
            patch = patch.reshape(tho * wo_pad, cin)
            w_tap = w_ref[kh, kw]
            if compute_dtype is not None:
                patch = patch.astype(compute_dtype)
                w_tap = w_tap.astype(compute_dtype)
            acc = acc + jnp.dot(patch, w_tap, preferred_element_type=jnp.float32)
    acc = acc + b_ref[...].astype(jnp.float32)
    o_ref[0] = acc.astype(o_ref.dtype)


def _avgpool_downsample_kernel(x_ref, o_ref):
    """2x2 average pool (stride 2) on a free view of the NHWC input.

    x_ref : (1, tHo, 2, Wo, 2*C)   last dim packs (col parity, channel)
    o_ref : (1, tHo, Wo, C)
    """
    c = o_ref.shape[-1]
    x = x_ref[0].astype(jnp.float32)          # (tHo, 2, Wo, 2C)
    s = x[:, 0] + x[:, 1]                     # sum over row parity -> (tHo, Wo, 2C)
    o_ref[0] = ((s[:, :, :c] + s[:, :, c:]) * 0.25).astype(o_ref.dtype)


# ----------------------------------------------------------------------------
# Wrappers (layout / padding / tiling glue)
# ----------------------------------------------------------------------------
def downsample_conv(x_nchw, weight_oihw, bias, padding=1, compute_dtype=None):
    """Conv2d(kernel=3, stride=2, padding=padding) + bias. NCHW in / NCHW out."""
    N, Cin, H, W = x_nchw.shape
    Cout = weight_oihw.shape[0]
    dtype = x_nchw.dtype
    isz = jnp.dtype(dtype).itemsize

    Ho = (H + 2 * padding - 3) // 2 + 1
    Wo = (W + 2 * padding - 3) // 2 + 1
    if Ho <= 0 or Wo <= 0:
        raise ValueError("input too small for a stride-2 3x3 convolution")

    # Lane-dense output channels (multiple of 128); padded cols sliced off after.
    Coutp = _round_up(Cout, 128)
    if Coutp <= 256:
        tCout = Coutp
    elif Coutp % 256 == 0:
        tCout = 256
    else:
        tCout = 128
    nCo = Coutp // tCout

    # Output width padded to a multiple of 8 so in-kernel reshapes are free.
    Wo_pad = _round_up(Wo, 8)
    Wpc = Wo_pad + 1                           # phase columns (incl. +1 halo col)

    # Row tile from a VMEM budget: 2x phases + 2x output (double buffers) + acc.
    per_row = (2 * (4 * Wpc * Cin * isz)
               + 2 * (Wo_pad * tCout * isz)
               + Wo_pad * tCout * 4)
    fixed = 2 * (9 * Cin * tCout * 4) + 2 * tCout * 4
    tHo = _pick_row_tile(Ho, per_row, fixed)
    if N * nCo == 1:                           # keep both v7x TensorCores busy
        tHo = min(tHo, max(1, pl.cdiv(Ho, 2)))
    nH = pl.cdiv(Ho, tHo)
    Ho_pad = nH * tHo

    # NCHW -> NHWC, zero pad: conv padding + alignment/halo padding.
    Hph = Ho_pad + 1                           # phase rows (incl. +1 halo row)
    Hp, Wp = 2 * Hph, 2 * Wpc
    x = jnp.transpose(x_nchw, (0, 2, 3, 1))
    x_pad = jnp.pad(x, ((0, 0),
                        (padding, Hp - H - padding),
                        (padding, Wp - W - padding),
                        (0, 0)))

    # Phase decomposition pre-tiled over output rows with a 1-row halo:
    #   ph_t[n, t, 2a+b, i, j, c] = x_pad[n, 2*(t*tHo + i) + a, 2*j + b, c]
    tiles = []
    for t in range(nH):
        r0 = t * tHo
        phs = [x_pad[:, 2 * r0 + a: 2 * (r0 + tHo) + a + 1: 2, b::2, :]
               for a in range(2) for b in range(2)]
        tiles.append(jnp.stack(phs, axis=1))            # (N, 4, tHo+1, Wpc, Cin)
    ph_t = jnp.stack(tiles, axis=1)                     # (N, nH, 4, tHo+1, Wpc, Cin)

    w = jnp.transpose(weight_oihw, (2, 3, 1, 0))        # (3, 3, Cin, Cout)
    w = jnp.pad(w, ((0, 0), (0, 0), (0, 0), (0, Coutp - Cout)))
    b2 = jnp.pad(bias, (0, Coutp - Cout)).reshape(1, Coutp)

    kernel = functools.partial(_conv_downsample_kernel, wo_pad=Wo_pad,
                               compute_dtype=compute_dtype)
    out = pl.pallas_call(
        kernel,
        out_shape=jax.ShapeDtypeStruct((N, Ho_pad * Wo_pad, Coutp), dtype),
        grid=(N, nCo, nH),
        in_specs=[
            pl.BlockSpec((1, 1, 4, tHo + 1, Wpc, Cin),
                         lambda n, co, t: (n, t, 0, 0, 0, 0)),
            pl.BlockSpec((3, 3, Cin, tCout), lambda n, co, t: (0, 0, 0, co)),
            pl.BlockSpec((1, tCout), lambda n, co, t: (0, co)),
        ],
        out_specs=pl.BlockSpec((1, tHo * Wo_pad, tCout),
                               lambda n, co, t: (n, t, co)),
        compiler_params=pltpu.CompilerParams(
            dimension_semantics=("parallel", "parallel", "parallel"),
            vmem_limit_bytes=_VMEM_LIMIT_BYTES),
    )(ph_t, w, b2)

    out = out.reshape(N, Ho_pad, Wo_pad, Coutp)[:, :Ho, :Wo, :Cout]
    return jnp.transpose(out, (0, 3, 1, 2))             # back to NCHW


def downsample_pool(x_nchw):
    """AvgPool2d(kernel=2, stride=2). NCHW in / NCHW out."""
    N, C, H, W = x_nchw.shape
    dtype = x_nchw.dtype
    isz = jnp.dtype(dtype).itemsize
    Ho, Wo = H // 2, W // 2

    per_row = (2 * (4 * Wo * C * isz)        # input rows (double buffered)
               + 2 * (Wo * C * isz)          # output rows (double buffered)
               + 4 * (Wo * C * 4))           # f32 temporaries
    tHo = _pick_row_tile(Ho, per_row)
    if N == 1:                               # keep both v7x TensorCores busy
        tHo = min(tHo, max(1, pl.cdiv(Ho, 2)))
    nH = pl.cdiv(Ho, tHo)
    Ho_pad = nH * tHo

    x = jnp.transpose(x_nchw, (0, 2, 3, 1))             # NHWC
    x = x[:, :2 * Ho, :2 * Wo, :]                       # floor crop (AvgPool2d)
    if Ho_pad != Ho:
        x = jnp.pad(x, ((0, 0), (0, 2 * (Ho_pad - Ho)), (0, 0), (0, 0)))
    # Free view reshape — no pre-materialized phases tensor.
    x6 = x.reshape(N, Ho_pad, 2, Wo, 2 * C)

    out = pl.pallas_call(
        _avgpool_downsample_kernel,
        out_shape=jax.ShapeDtypeStruct((N, Ho_pad, Wo, C), dtype),
        grid=(N, nH),
        in_specs=[pl.BlockSpec((1, tHo, 2, Wo, 2 * C),
                               lambda n, t: (n, t, 0, 0, 0))],
        out_specs=pl.BlockSpec((1, tHo, Wo, C), lambda n, t: (n, t, 0, 0)),
        compiler_params=pltpu.CompilerParams(
            dimension_semantics=("parallel", "parallel"),
            vmem_limit_bytes=_VMEM_LIMIT_BYTES),
    )(x6)
    out = out[:, :Ho]
    return jnp.transpose(out, (0, 3, 1, 2))             # back to NCHW


def downsample(x_nchw, use_conv, weight=None, bias=None, padding=1,
               compute_dtype=None, num_channels=None):
    """Mirrors Downsample.forward (emb is ignored by the PyTorch module)."""
    if num_channels is not None and x_nchw.shape[1] != num_channels:
        raise ValueError("Input number of channels does not match num_channels")
    if use_conv:
        return downsample_conv(x_nchw, weight, bias, padding=padding,
                               compute_dtype=compute_dtype)
    return downsample_pool(x_nchw)


# ----------------------------------------------------------------------------
# Pure-JAX references (for correctness checking only)
# ----------------------------------------------------------------------------
def _ref_conv(x, w, b, padding=1):
    y = jax.lax.conv_general_dilated(
        x, w, window_strides=(2, 2),
        padding=((padding, padding), (padding, padding)),
        dimension_numbers=("NCHW", "OIHW", "NCHW"))
    return y + b[None, :, None, None]


def _ref_pool(x):
    N, C, H, W = x.shape
    return x.reshape(N, C, H // 2, 2, W // 2, 2).mean(axis=(3, 5))


if __name__ == "__main__":
    key = jax.random.PRNGKey(0)
    kx, kw, kb = jax.random.split(key, 3)

    N, Cin, H, W = 2, 4, 16, 16
    Cout = 8

    x = jax.random.normal(kx, (N, Cin, H, W), jnp.float32)
    weight = jax.random.normal(kw, (Cout, Cin, 3, 3), jnp.float32) * 0.1
    bias = jax.random.normal(kb, (Cout,), jnp.float32) * 0.1

    # use_conv=True path (Conv k=3, s=2, p=1)
    y_conv = downsample(x, use_conv=True, weight=weight, bias=bias, padding=1)
    jax.block_until_ready(y_conv)
    assert y_conv.shape == (N, Cout, H // 2, W // 2)
    assert jnp.allclose(y_conv, _ref_conv(x, weight, bias), atol=1e-4, rtol=1e-4)

    # use_conv=False path (AvgPool k=2, s=2; out_channels == num_channels)
    y_pool = downsample(x, use_conv=False)
    jax.block_until_ready(y_pool)
    assert y_pool.shape == (N, Cin, H // 2, W // 2)
    assert jnp.allclose(y_pool, _ref_pool(x), atol=1e-5, rtol=1e-5)

    print("KERNEL_OK")
</pallas_src>

<mosaic_0001>
module attributes {stable_mosaic.version = 11 : i64} {
  func.func @_conv_downsample_kernel(%arg0: i32, %arg1: i32, %arg2: i32, %arg3: memref<1x1x4x9x9x4xf32, #tpu.memory_space<vmem>>, %arg4: memref<3x3x4x128xf32, #tpu.memory_space<vmem>>, %arg5: memref<1x128xf32, #tpu.memory_space<vmem>>, %arg6: memref<1x64x128xf32, #tpu.memory_space<vmem>>) attributes {dimension_semantics = [#tpu.dimension_semantics<parallel>, #tpu.dimension_semantics<parallel>, #tpu.dimension_semantics<parallel>], iteration_bounds = array<i64: 2, 1, 1>, scalar_prefetch = 0 : i64, scratch_operands = 0 : i64, tpu.core_type = #tpu.core_type<tc>, window_params = [{transform_indices = @transform_0, window_bounds = array<i64: 1, 1, 4, 9, 9, 4>}, {transform_indices = @transform_1, window_bounds = array<i64: 3, 3, 4, 128>}, {transform_indices = @transform_2, window_bounds = array<i64: 1, 128>}, {transform_indices = @transform_3, window_bounds = array<i64: 1, 64, 128>}]} {
    %cst = arith.constant 0.000000e+00 : f32
    %0 = vector.broadcast %cst : f32 to vector<64x128xf32>
    %c0 = arith.constant 0 : index
    %c0_0 = arith.constant 0 : index
    %c0_1 = arith.constant 0 : index
    %c0_2 = arith.constant 0 : index
    %c0_3 = arith.constant 0 : index
    %c0_4 = arith.constant 0 : index
    %1 = vector.load %arg3[%c0, %c0_0, %c0_1, %c0_2, %c0_3, %c0_4] : memref<1x1x4x9x9x4xf32, #tpu.memory_space<vmem>>, vector<1x1x1x8x8x4xf32>
    %2 = vector.shape_cast %1 : vector<1x1x1x8x8x4xf32> to vector<8x8x4xf32>
    %3 = vector.shape_cast %2 : vector<8x8x4xf32> to vector<64x4xf32>
    %c0_5 = arith.constant 0 : index
    %c0_6 = arith.constant 0 : index
    %c0_7 = arith.constant 0 : index
    %c0_8 = arith.constant 0 : index
    %4 = vector.load %arg4[%c0_5, %c0_6, %c0_7, %c0_8] : memref<3x3x4x128xf32, #tpu.memory_space<vmem>>, vector<1x1x4x128xf32>
    %5 = vector.shape_cast %4 : vector<1x1x4x128xf32> to vector<4x128xf32>
    %cst_9 = arith.constant dense<0.000000e+00> : vector<64x128xf32>
    %6 = tpu.matmul %3, %5, %cst_9 {dimension_numbers = #tpu.dot_dimension_numbers<[1], [0], [0], [1], [0, 0, 1, 1], [], []>} : vector<64x4xf32>, vector<4x128xf32>, vector<64x128xf32> -> vector<64x128xf32>
    %7 = arith.addf %0, %6 : vector<64x128xf32>
    %c0_10 = arith.constant 0 : index
    %c0_11 = arith.constant 0 : index
    %c1 = arith.constant 1 : index
    %c0_12 = arith.constant 0 : index
    %c0_13 = arith.constant 0 : index
    %c0_14 = arith.constant 0 : index
    %8 = vector.load %arg3[%c0_10, %c0_11, %c1, %c0_12, %c0_13, %c0_14] : memref<1x1x4x9x9x4xf32, #tpu.memory_space<vmem>>, vector<1x1x1x8x8x4xf32>
    %9 = vector.shape_cast %8 : vector<1x1x1x8x8x4xf32> to vector<8x8x4xf32>
    %10 = vector.shape_cast %9 : vector<8x8x4xf32> to vector<64x4xf32>
    %c0_15 = arith.constant 0 : index
    %c1_16 = arith.constant 1 : index
    %c0_17 = arith.constant 0 : index
    %c0_18 = arith.constant 0 : index
    %11 = vector.load %arg4[%c0_15, %c1_16, %c0_17, %c0_18] : memref<3x3x4x128xf32, #tpu.memory_space<vmem>>, vector<1x1x4x128xf32>
    %12 = vector.shape_cast %11 : vector<1x1x4x128xf32> to vector<4x128xf32>
    %cst_19 = arith.constant dense<0.000000e+00> : vector<64x128xf32>
    %13 = tpu.matmul %10, %12, %cst_19 {dimension_numbers = #tpu.dot_dimension_numbers<[1], [0], [0], [1], [0, 0, 1, 1], [], []>} : vector<64x4xf32>, vector<4x128xf32>, vector<64x128xf32> -> vector<64x128xf32>
    %14 = arith.addf %7, %13 : vector<64x128xf32>
    %c0_20 = arith.constant 0 : index
    %c0_21 = arith.constant 0 : index
    %c0_22 = arith.constant 0 : index
    %c0_23 = arith.constant 0 : index
    %c1_24 = arith.constant 1 : index
    %c0_25 = arith.constant 0 : index
    %15 = vector.load %arg3[%c0_20, %c0_21, %c0_22, %c0_23, %c1_24, %c0_25] : memref<1x1x4x9x9x4xf32, #tpu.memory_space<vmem>>, vector<1x1x1x8x8x4xf32>
    %16 = vector.shape_cast %15 : vector<1x1x1x8x8x4xf32> to vector<8x8x4xf32>
    %17 = vector.shape_cast %16 : vector<8x8x4xf32> to vector<64x4xf32>
    %c0_26 = arith.constant 0 : index
    %c2 = arith.constant 2 : index
    %c0_27 = arith.constant 0 : index
    %c0_28 = arith.constant 0 : index
    %18 = vector.load %arg4[%c0_26, %c2, %c0_27, %c0_28] : memref<3x3x4x128xf32, #tpu.memory_space<vmem>>, vector<1x1x4x128xf32>
    %19 = vector.shape_cast %18 : vector<1x1x4x128xf32> to vector<4x128xf32>
    %cst_29 = arith.constant dense<0.000000e+00> : vector<64x128xf32>
    %20 = tpu.matmul %17, %19, %cst_29 {dimension_numbers = #tpu.dot_dimension_numbers<[1], [0], [0], [1], [0, 0, 1, 1], [], []>} : vector<64x4xf32>, vector<4x128xf32>, vector<64x128xf32> -> vector<64x128xf32>
    %21 = arith.addf %14, %20 : vector<64x128xf32>
    %c0_30 = arith.constant 0 : index
    %c0_31 = arith.constant 0 : index
    %c2_32 = arith.constant 2 : index
    %c0_33 = arith.constant 0 : index
    %c0_34 = arith.constant 0 : index
    %c0_35 = arith.constant 0 : index
    %22 = vector.load %arg3[%c0_30, %c0_31, %c2_32, %c0_33, %c0_34, %c0_35] : memref<1x1x4x9x9x4xf32, #tpu.memory_space<vmem>>, vector<1x1x1x8x8x4xf32>
    %23 = vector.shape_cast %22 : vector<1x1x1x8x8x4xf32> to vector<8x8x4xf32>
    %24 = vector.shape_cast %23 : vector<8x8x4xf32> to vector<64x4xf32>
    %c1_36 = arith.constant 1 : index
    %c0_37 = arith.constant 0 : index
    %c0_38 = arith.constant 0 : index
    %c0_39 = arith.constant 0 : index
    %25 = vector.load %arg4[%c1_36, %c0_37, %c0_38, %c0_39] : memref<3x3x4x128xf32, #tpu.memory_space<vmem>>, vector<1x1x4x128xf32>
    %26 = vector.shape_cast %25 : vector<1x1x4x128xf32> to vector<4x128xf32>
    %cst_40 = arith.constant dense<0.000000e+00> : vector<64x128xf32>
    %27 = tpu.matmul %24, %26, %cst_40 {dimension_numbers = #tpu.dot_dimension_numbers<[1], [0], [0], [1], [0, 0, 1, 1], [], []>} : vector<64x4xf32>, vector<4x128xf32>, vector<64x128xf32> -> vector<64x128xf32>
    %28 = arith.addf %21, %27 : vector<64x128xf32>
    %c0_41 = arith.constant 0 : index
    %c0_42 = arith.constant 0 : index
    %c3 = arith.constant 3 : index
    %c0_43 = arith.constant 0 : index
    %c0_44 = arith.constant 0 : index
    %c0_45 = arith.constant 0 : index
    %29 = vector.load %arg3[%c0_41, %c0_42, %c3, %c0_43, %c0_44, %c0_45] : memref<1x1x4x9x9x4xf32, #tpu.memory_space<vmem>>, vector<1x1x1x8x8x4xf32>
    %30 = vector.shape_cast %29 : vector<1x1x1x8x8x4xf32> to vector<8x8x4xf32>
    %31 = vector.shape_cast %30 : vector<8x8x4xf32> to vector<64x4xf32>
    %c1_46 = arith.constant 1 : index
    %c1_47 = arith.constant 1 : index
    %c0_48 = arith.constant 0 : index
    %c0_49 = arith.constant 0 : index
    %32 = vector.load %arg4[%c1_46, %c1_47, %c0_48, %c0_49] : memref<3x3x4x128xf32, #tpu.memory_space<vmem>>, vector<1x1x4x128xf32>
    %33 = vector.shape_cast %32 : vector<1x1x4x128xf32> to vector<4x128xf32>
    %cst_50 = arith.constant dense<0.000000e+00> : vector<64x128xf32>
    %34 = tpu.matmul %31, %33, %cst_50 {dimension_numbers = #tpu.dot_dimension_numbers<[1], [0], [0], [1], [0, 0, 1, 1], [], []>} : vector<64x4xf32>, vector<4x128xf32>, vector<64x128xf32> -> vector<64x128xf32>
    %35 = arith.addf %28, %34 : vector<64x128xf32>
    %c0_51 = arith.constant 0 : index
    %c0_52 = arith.constant 0 : index
    %c2_53 = arith.constant 2 : index
    %c0_54 = arith.constant 0 : index
    %c1_55 = arith.constant 1 : index
    %c0_56 = arith.constant 0 : index
    %36 = vector.load %arg3[%c0_51, %c0_52, %c2_53, %c0_54, %c1_55, %c0_56] : memref<1x1x4x9x9x4xf32, #tpu.memory_space<vmem>>, vector<1x1x1x8x8x4xf32>
    %37 = vector.shape_cast %36 : vector<1x1x1x8x8x4xf32> to vector<8x8x4xf32>
    %38 = vector.shape_cast %37 : vector<8x8x4xf32> to vector<64x4xf32>
    %c1_57 = arith.constant 1 : index
    %c2_58 = arith.constant 2 : index
    %c0_59 = arith.constant 0 : index
    %c0_60 = arith.constant 0 : index
    %39 = vector.load %arg4[%c1_57, %c2_58, %c0_59, %c0_60] : memref<3x3x4x128xf32, #tpu.memory_space<vmem>>, vector<1x1x4x128xf32>
    %40 = vector.shape_cast %39 : vector<1x1x4x128xf32> to vector<4x128xf32>
    %cst_61 = arith.constant dense<0.000000e+00> : vector<64x128xf32>
    %41 = tpu.matmul %38, %40, %cst_61 {dimension_numbers = #tpu.dot_dimension_numbers<[1], [0], [0], [1], [0, 0, 1, 1], [], []>} : vector<64x4xf32>, vector<4x128xf32>, vector<64x128xf32> -> vector<64x128xf32>
    %42 = arith.addf %35, %41 : vector<64x128xf32>
    %c0_62 = arith.constant 0 : index
    %c0_63 = arith.constant 0 : index
    %c0_64 = arith.constant 0 : index
    %c1_65 = arith.constant 1 : index
    %c0_66 = arith.constant 0 : index
    %c0_67 = arith.constant 0 : index
    %43 = vector.load %arg3[%c0_62, %c0_63, %c0_64, %c1_65, %c0_66, %c0_67] : memref<1x1x4x9x9x4xf32, #tpu.memory_space<vmem>>, vector<1x1x1x8x8x4xf32>
    %44 = vector.shape_cast %43 : vector<1x1x1x8x8x4xf32> to vector<8x8x4xf32>
    %45 = vector.shape_cast %44 : vector<8x8x4xf32> to vector<64x4xf32>
    %c2_68 = arith.constant 2 : index
    %c0_69 = arith.constant 0 : index
    %c0_70 = arith.constant 0 : index
    %c0_71 = arith.constant 0 : index
    %46 = vector.load %arg4[%c2_68, %c0_69, %c0_70, %c0_71] : memref<3x3x4x128xf32, #tpu.memory_space<vmem>>, vector<1x1x4x128xf32>
    %47 = vector.shape_cast %46 : vector<1x1x4x128xf32> to vector<4x128xf32>
    %cst_72 = arith.constant dense<0.000000e+00> : vector<64x128xf32>
    %48 = tpu.matmul %45, %47, %cst_72 {dimension_numbers = #tpu.dot_dimension_numbers<[1], [0], [0], [1], [0, 0, 1, 1], [], []>} : vector<64x4xf32>, vector<4x128xf32>, vector<64x128xf32> -> vector<64x128xf32>
    %49 = arith.addf %42, %48 : vector<64x128xf32>
    %c0_73 = arith.constant 0 : index
    %c0_74 = arith.constant 0 : index
    %c1_75 = arith.constant 1 : index
    %c1_76 = arith.constant 1 : index
    %c0_77 = arith.constant 0 : index
    %c0_78 = arith.constant 0 : index
    %50 = vector.load %arg3[%c0_73, %c0_74, %c1_75, %c1_76, %c0_77, %c0_78] : memref<1x1x4x9x9x4xf32, #tpu.memory_space<vmem>>, vector<1x1x1x8x8x4xf32>
    %51 = vector.shape_cast %50 : vector<1x1x1x8x8x4xf32> to vector<8x8x4xf32>
    %52 = vector.shape_cast %51 : vector<8x8x4xf32> to vector<64x4xf32>
    %c2_79 = arith.constant 2 : index
    %c1_80 = arith.constant 1 : index
    %c0_81 = arith.constant 0 : index
    %c0_82 = arith.constant 0 : index
    %53 = vector.load %arg4[%c2_79, %c1_80, %c0_81, %c0_82] : memref<3x3x4x128xf32, #tpu.memory_space<vmem>>, vector<1x1x4x128xf32>
    %54 = vector.shape_cast %53 : vector<1x1x4x128xf32> to vector<4x128xf32>
    %cst_83 = arith.constant dense<0.000000e+00> : vector<64x128xf32>
    %55 = tpu.matmul %52, %54, %cst_83 {dimension_numbers = #tpu.dot_dimension_numbers<[1], [0], [0], [1], [0, 0, 1, 1], [], []>} : vector<64x4xf32>, vector<4x128xf32>, vector<64x128xf32> -> vector<64x128xf32>
    %56 = arith.addf %49, %55 : vector<64x128xf32>
    %c0_84 = arith.constant 0 : index
    %c0_85 = arith.constant 0 : index
    %c0_86 = arith.constant 0 : index
    %c1_87 = arith.constant 1 : index
    %c1_88 = arith.constant 1 : index
    %c0_89 = arith.constant 0 : index
    %57 = vector.load %arg3[%c0_84, %c0_85, %c0_86, %c1_87, %c1_88, %c0_89] : memref<1x1x4x9x9x4xf32, #tpu.memory_space<vmem>>, vector<1x1x1x8x8x4xf32>
    %58 = vector.shape_cast %57 : vector<1x1x1x8x8x4xf32> to vector<8x8x4xf32>
    %59 = vector.shape_cast %58 : vector<8x8x4xf32> to vector<64x4xf32>
    %c2_90 = arith.constant 2 : index
    %c2_91 = arith.constant 2 : index
    %c0_92 = arith.constant 0 : index
    %c0_93 = arith.constant 0 : index
    %60 = vector.load %arg4[%c2_90, %c2_91, %c0_92, %c0_93] : memref<3x3x4x128xf32, #tpu.memory_space<vmem>>, vector<1x1x4x128xf32>
    %61 = vector.shape_cast %60 : vector<1x1x4x128xf32> to vector<4x128xf32>
    %cst_94 = arith.constant dense<0.000000e+00> : vector<64x128xf32>
    %62 = tpu.matmul %59, %61, %cst_94 {dimension_numbers = #tpu.dot_dimension_numbers<[1], [0], [0], [1], [0, 0, 1, 1], [], []>} : vector<64x4xf32>, vector<4x128xf32>, vector<64x128xf32> -> vector<64x128xf32>
    %63 = arith.addf %56, %62 : vector<64x128xf32>
    %c0_95 = arith.constant 0 : index
    %c0_96 = arith.constant 0 : index
    %64 = vector.load %arg5[%c0_95, %c0_96] : memref<1x128xf32, #tpu.memory_space<vmem>>, vector<1x128xf32>
    %65 = vector.broadcast %64 : vector<1x128xf32> to vector<64x128xf32>
    %66 = arith.addf %63, %65 : vector<64x128xf32>
    %c0_97 = arith.constant 0 : index
    %c0_98 = arith.constant 0 : index
    %c0_99 = arith.constant 0 : index
    %67 = vector.load %arg6[%c0_97, %c0_98, %c0_99] : memref<1x64x128xf32, #tpu.memory_space<vmem>>, vector<1x64x128xf32>
    %68 = vector.shape_cast %67 : vector<1x64x128xf32> to vector<64x128xf32>
    %69 = vector.shape_cast %66 : vector<64x128xf32> to vector<1x64x128xf32>
    tpu.vector_store %arg6[%c0_97, %c0_98, %c0_99], %69 {strides = array<i32>} : memref<1x64x128xf32, #tpu.memory_space<vmem>>, vector<1x64x128xf32>,
    return
  }
  func.func @transform_0(%arg0: i32, %arg1: i32, %arg2: i32) -> (i32, i32, i32, i32, i32, i32) {
    %c0_i32 = arith.constant 0 : i32
    %c0_i32_0 = arith.constant 0 : i32
    %c0_i32_1 = arith.constant 0 : i32
    %c0_i32_2 = arith.constant 0 : i32
    %c0_i32_3 = arith.constant 0 : i32
    return %arg0, %arg2, %c0_i32, %c0_i32_0, %c0_i32_1, %c0_i32_2 : i32, i32, i32, i32, i32, i32
  }
  func.func @transform_1(%arg0: i32, %arg1: i32, %arg2: i32) -> (i32, i32, i32, i32) {
    %c0_i32 = arith.constant 0 : i32
    %c0_i32_0 = arith.constant 0 : i32
    %c0_i32_1 = arith.constant 0 : i32
    %c0_i32_2 = arith.constant 0 : i32
    return %c0_i32, %c0_i32_0, %c0_i32_1, %arg1 : i32, i32, i32, i32
  }
  func.func @transform_2(%arg0: i32, %arg1: i32, %arg2: i32) -> (i32, i32) {
    %c0_i32 = arith.constant 0 : i32
    %c0_i32_0 = arith.constant 0 : i32
    return %c0_i32, %arg1 : i32, i32
  }
  func.func @transform_3(%arg0: i32, %arg1: i32, %arg2: i32) -> (i32, i32, i32) {
    %c0_i32 = arith.constant 0 : i32
    return %arg0, %arg2, %arg1 : i32, i32, i32
  }
}

</mosaic_0001>

<bundles_post_ra>
// kernel: tpu_custom_call.1
= control target key start
LH: loop header
LB: loop body
LE: loop exit
PB: predicated region body
PF: predicated region fallthrough
CT: control target
= control target key end

     0   :  { %8 = vsyncpa [#allocation3], 0  ;;  %s1861_s0 = inlined_call_operand.vmem [shape: f32[2,1,4,9,9,4], index: 0, kind: input, shape index: {}]   ;;  %s1862_s1 = inlined_call_operand.vmem [shape: f32[3,3,4,128], index: 1, kind: input, shape index: {}]   ;;  %s1863_s2 = inlined_call_operand.vmem [shape: f32[1,128], index: 2, kind: input, shape index: {}]   ;;  %s1864_s3 = inlined_call_operand.hbm [shape: f32[2,64,128], index: 3, kind: output, shape index: {}]  }
   0x1   :  { %10 = vsyncpa [#allocation3 + $0x1], 0  ;;  %s1478_s12 = smov 0   ;;  %s1480_s13 = smov 0  }
   0x2   :  { %s1482_s14 = smov 0   ;;  %s1484_s15 = smov 0  }
   0x3   :  { %s1486_s16 = smov 0   ;;  %s1488_s17 = smov 0  }
   0x4 LB: > { %s1154_s18 = sadd.s32 4294967295, %s1454_s17   ;;  %s1155_s19 = sadd.s32 4294967294, %s1454_s17   ;;  %s1454_s17 = sphi %s1488_s17, %s16_s17   ;;  %s1450_s16 = sphi %s1486_s16, %s1871_s16   ;;  %s1446_s15 = sphi %s1484_s15, %s1870_s15   ;;  %s1442_s14 = sphi %s1482_s14, %s1869_s14   ;;  %s1438_s13 = sphi %s1480_s13, %s1868_s13   ;;  %s1434_s12 = sphi %s1478_s12, %s1867_s12  }
   0x5   : > { %s35_s20 = sadd.s32 1, %s1450_s16  ;;  %s126_s21 = sadd.s32 1, %s1442_s14 }
   0x6   : > { %p37_p0 = scmp.ge.s32.totalorder %s35_s20, 2  ;;  %p136_p1 = scmp.ne.s32.totalorder %s1442_s14, %s1438_s13 }
   0x7   : > { %p137_p2 = scmp.eq.s32.totalorder %s1154_s18, 1  ;;  %p142_p3 = scmp.ne.s32.totalorder %s1438_s13, %s1434_s12 }
   0x8   : > { %s1873_s20 = smov (%p37_p0, %s35_s20), 0  ;;  %p143_p5 = scmp.eq.s32.totalorder %s1155_s19, 1 }
   0x9   : > { %p1518_p4 = por %p137_p2, %p136_p1  ;;  %s119_s23 = ssub.s32 %s1450_s16, %s1873_s20 }
   0xa   : > { %p1160_p6 = scmp.ge.s32.totalorder %s1454_s17, 1  ;;  %p124_p7 = scmp.eq.s32.totalorder %s119_s23, 0 }
   0xb   : > { %p1525_p8 = por %p143_p5, %p142_p3  ;;  %p186_p9 = scmp.lt.s32.totalorder %s1454_s17, 3 }
   0xc   : > { %s1531_s25 = scalar_select %p124_p7, %s1442_s14, %s126_s21  }
   0xd   : > { %p187_p10 = pnand %p1160_p6, %p186_p9 }
   0xe   : > { %p221_p11 = scmp.lt.s32.totalorder (!%p187_p10), %s1446_s15, 1  ;;  %s218_s5 = sand.u32 (!%p187_p10), 1, %s1438_s13  }
   0xf   : > { %190 = sbr.rel (%p187_p10) target bundleno = 307 (0x133), region = 32  ;;  %s1161_s6 = sshll.u32 (!%p187_p10), %s218_s5, 6 }
  0x10   : > { %s1784_s9 = scalar_lea.vmem (!%p187_p10), [#allocation2], %s1161_s6  ;;  %s1396_s30 = scalar_lea.hbm (!%p187_p10), %s1864_s3, 128 }
  0x11   : > { %s1038_s21 = sshll.u32 (!%p187_p10), %s1784_s9, 4  ;;  %s1039_s21 = int_to_ptr.vmem [resolvable:$true] %s1038_s21 }
  0x14   : > { %v1171_v0 = vld [vmem:[%s1862_s1 + $0x4] sm:$0xf]  ;;  %vm283_vm0 = vcmask 1043456   ;;  %v1190_v1 = vld [vmem:[%s1862_s1 + $0x8] sm:$0xf]  ;;  %s222_s7 = scalar_select %p221_p11, %s1446_s15, 1 }
  0x15   : > { %1314 = vmatpush.msk.msra.mxu1 %vm283_vm0, %v1171_v0  ;;  %1315 = vmatpush.msk.msra.mxu2 %vm283_vm0, %v1171_v0  ;;  %v1208_v2 = vld [vmem:[%s1862_s1 + $0xc] sm:$0xf]  ;;  %v246_v3 = vld [vmem:[%s1862_s1] sm:$0xf]  ;;  %v1226_v4 = vld [vmem:[%s1862_s1 + $0x10] sm:$0xf] }
  0x16   : > { %1316 = vmatpush.msk.msra.mxu3 %vm283_vm0, %v1171_v0  ;;  %s1317_s10 = smul.u32 576, %s222_s7  ;;  %1172 = vmatpush.msk.msra.mxu0 %vm283_vm0, %v1171_v0  ;;  %vm258_vm1 = vcmask 31744   ;;  %v1262_v5 = vld [vmem:[%s1862_s1 + $0x18] sm:$0xf]  ;;  %v1280_v6 = vld [vmem:[%s1862_s1 + $0x1c] sm:$0xf] }
  0x17   : > { %1191 = vmatpush.msk.msrb.mxu2 %vm283_vm0, %v1190_v1  ;;  %1181 = vmatpush.msk.msrb.mxu1 %vm283_vm0, %v246_v3  ;;  %v1244_v11 = vld [vmem:[%s1862_s1 + $0x14] sm:$0xf]  ;;  %v1298_v12 = vld [vmem:[%s1862_s1 + $0x20] sm:$0xf] }
  0x18   : > { %1209 = vmatpush.msk.msrb.mxu3 %vm283_vm0, %v1208_v2  ;;  %1227 = vmatpush.msk.msrb.mxu0 %vm283_vm0, %v1226_v4  ;;  %s1561_s19 = scalar_lea.vmem %s1861_s0, %s1317_s10  ;;  %s1313_s10 = sshll.u32 %s1446_s15, 6 }
  0x19   : > { %v1570_v7 = vld [vmem:[%s1561_s19 + $0xb0] sm:$0xff]  ;;  %v1597_v13 = vld [vmem:[%s1561_s19 + $0xc0] sm:$0xff]  ;;  %s1023_s15 = scalar_lea.sflag [#allocation3], %s218_s5 }
  0x1a   : > { %v1573_v8 = vld [vmem:[%s1561_s19 + $0xd0] sm:$0xff]  ;;  %1175 = vmatmul.msk.f32.vlgmr.msra.gmra.mxu1 %vm258_vm1, %v1570_v7  ;;  %v1600_v14 = vld [vmem:[%s1561_s19 + $0xe0] sm:$0xff] }
  0x1b   : > { %v1576_v9 = vld [vmem:[%s1561_s19 + $0xf0] sm:$0xff]  ;;  %1177 = vmatmul.msk.f32.vlgmr.msra.gmra.mxu2 %vm258_vm1, %v1573_v8  ;;  %1245 = vmatpush.msk.msra.mxu1 %vm283_vm0, %v1244_v11  ;;  %v1603_v15 = vld [vmem:[%s1561_s19 + $0x100] sm:$0xff] }
  0x1c   : > { %v1163_v10 = vld [vmem:[%s1561_s19 + $0x90] sm:$0xff]  ;;  %1179 = vmatmul.msk.f32.vlgmr.msra.gmra.mxu3 %vm258_vm1, %v1576_v9  ;;  %1263 = vmatpush.msk.msra.mxu2 %vm283_vm0, %v1262_v5  ;;  %v1606_v16 = vld [vmem:[%s1561_s19 + $0xa0] sm:$0xff] }
  0x1d   : > { %1173 = vmatmul.msk.f32.vlgmr.msra.gmra.mxu0 %vm258_vm1, %v1163_v10  ;;  %1281 = vmatpush.msk.msra.mxu3 %vm283_vm0, %v1280_v6  ;;  %v238_v17 = vld [vmem:[%s1561_s19] sm:$0xff]  ;;  %v1218_v20 = vld [vmem:[%s1561_s19 + $0x1b0] sm:$0xff] }
  0x1e   : > { %1299 = vmatpush.msk.msra.mxu0 %vm283_vm0, %v1298_v12  ;;  %v396_v18 = vld [vmem:[%s1561_s19 + $0x1] sm:$0xff]  ;;  %v239_v21 = vld [vmem:[%s1561_s19 + $0x10] sm:$0xff] }
  0x1f   : > { %v1200_v19 = vld [vmem:[%s1561_s19 + $0x120] sm:$0xff]  ;;  %v397_v22 = vld [vmem:[%s1561_s19 + $0x11] sm:$0xff] }
  0x20   : > { %v1201_v23 = vld [vmem:[%s1561_s19 + $0x130] sm:$0xff]  ;;  %v1219_v24 = vld [vmem:[%s1561_s19 + $0x1c0] sm:$0xff] }
  0x21   : > { %v240_v25 = vld [vmem:[%s1561_s19 + $0x20] sm:$0xff]  ;;  %v1220_v28 = vld [vmem:[%s1561_s19 + $0x1d0] sm:$0xff] }
  0x22   : > { %1176 = vmatmul.msk.f32.gmra.mxu1 %vm258_vm1, %v1597_v13  ;;  %v398_v26 = vld [vmem:[%s1561_s19 + $0x21] sm:$0xff]  ;;  %v241_v29 = vld [vmem:[%s1561_s19 + $0x30] sm:$0xff] }
  0x23   : > { %1178 = vmatmul.msk.f32.gmra.mxu2 %vm258_vm1, %v1600_v14  ;;  %v1202_v27 = vld [vmem:[%s1561_s19 + $0x140] sm:$0xff]  ;;  %v399_v30 = vld [vmem:[%s1561_s19 + $0x31] sm:$0xff] }
  0x24   : > { %1180 = vmatmul.msk.f32.gmra.mxu3 %vm258_vm1, %v1603_v15  ;;  %v1203_v31 = vld [vmem:[%s1561_s19 + $0x150] sm:$0xff]  ;;  %v1221_v32 = vld [vmem:[%s1561_s19 + $0x1e0] sm:$0xff] }
  0x25   : > { %1174 = vmatmul.msk.f32.gmra.mxu0 %vm258_vm1, %v1606_v16  ;;  %v242_v33 = vld [vmem:[%s1561_s19 + $0x40] sm:$0xff]  ;;  %v1222_v36 = vld [vmem:[%s1561_s19 + $0x1f0] sm:$0xff] }
  0x26   : > { %v400_v34 = vld [vmem:[%s1561_s19 + $0x41] sm:$0xff]  ;;  %v243_v37 = vld [vmem:[%s1561_s19 + $0x50] sm:$0xff] }
  0x27   : > { %v1204_v35 = vld [vmem:[%s1561_s19 + $0x160] sm:$0xff]  ;;  %v401_v38 = vld [vmem:[%s1561_s19 + $0x51] sm:$0xff] }
  0x28   : > { %v1205_v39 = vld [vmem:[%s1561_s19 + $0x170] sm:$0xff]  ;;  %v1223_v40 = vld [vmem:[%s1561_s19 + $0x200] sm:$0xff] }
  0x29   : > { %v244_v41 = vld [vmem:[%s1561_s19 + $0x60] sm:$0xff]  ;;  %v1224_v44 = vld [vmem:[%s1561_s19 + $0x210] sm:$0xff] }
  0x2a   : > { %1182 = vmatmul.msk.f32.vlgmr.msrb.gmra.mxu1 %vm258_vm1, %v238_v17  ;;  %v402_v42 = vld [vmem:[%s1561_s19 + $0x61] sm:$0xff]  ;;  %v245_v45 = vld [vmem:[%s1561_s19 + $0x70] sm:$0xff] }
  0x2b   : > { %1192 = vmatmul.msk.f32.vlgmr.msrb.gmra.mxu2 %vm258_vm1, %v396_v18  ;;  %v1206_v43 = vld [vmem:[%s1561_s19 + $0x180] sm:$0xff]  ;;  %v403_v46 = vld [vmem:[%s1561_s19 + $0x71] sm:$0xff] }
  0x2c   : > { %1210 = vmatmul.msk.f32.vlgmr.msrb.gmra.mxu3 %vm258_vm1, %v1200_v19  ;;  %v1207_v47 = vld [vmem:[%s1561_s19 + $0x190] sm:$0xff]  ;;  %v1225_v48 = vld [vmem:[%s1561_s19 + $0x220] sm:$0xff] }
  0x2d   : > { %1228 = vmatmul.msk.f32.vlgmr.msrb.gmra.mxu0 %vm258_vm1, %v1218_v20  ;;  %v1236_v49 = vld [vmem:[%s1561_s19 + $0x121] sm:$0xff]  ;;  %v1237_v50 = vld [vmem:[%s1561_s19 + $0x131] sm:$0xff] }
  0x2e   : > { %v1238_v51 = vld [vmem:[%s1561_s19 + $0x141] sm:$0xff]  ;;  %v1239_v52 = vld [vmem:[%s1561_s19 + $0x151] sm:$0xff] }
  0x2f   : > { %v1240_v53 = vld [vmem:[%s1561_s19 + $0x161] sm:$0xff]  ;;  %v1241_v54 = vld [vmem:[%s1561_s19 + $0x171] sm:$0xff] }
  0x30   : > { %v1242_v56 = vld [vmem:[%s1561_s19 + $0x181] sm:$0xff]  ;;  %v1243_v61 = vld [vmem:[%s1561_s19 + $0x191] sm:$0xff] }
  0x31   : > { %v1261_v62 = vld [vmem:[%s1561_s19 + $0x80] sm:$0xff]  ;;  %v1279_v63 = vld [vmem:[%s1561_s19 + $0x110] sm:$0xff] }
  0x32   : > { %1183 = vmatmul.msk.f32.gmra.mxu1 %vm258_vm1, %v239_v21  ;;  %v1297_v1 = vld [vmem:[%s1561_s19 + $0x81] sm:$0xff]  ;;  %s1037_s19 = scalar_lea.hbm %s1864_s3, %s1313_s10 }
  0x33   : > { %1193 = vmatmul.msk.f32.gmra.mxu2 %vm258_vm1, %v397_v22  ;;  %s1040_s23 = sshll.u32 %s1037_s19, 4  ;;  %s1041_s23 = int_to_ptr.hbm [resolvable:$true] %s1040_s23 }
  0x34   : > { %1211 = vmatmul.msk.f32.gmra.mxu3 %vm258_vm1, %v1201_v23  ;;  %s1390_s26 = sshra.s32 %s1041_s23, 4  ;;  %s1391_s26 = int_to_ptr.hbm [resolvable:$true] %s1390_s26 }
  0x35   : > { %1229 = vmatmul.msk.f32.gmra.mxu0 %vm258_vm1, %v1219_v24  ;;  %s1392_s27 = scalar_lea.hbm %s1391_s26, 64  ;;  %p1397_p1 = scmp.lt.s32.totalorder %s1391_s26, %s1864_s3 }
  0x36   : > { %p1393_p12 = scmp.ne.s32.totalorder %s1391_s26, %s1392_s27  ;;  %p1398_p2 = scmp.lt.s32.totalorder %s1396_s30, %s1392_s27 }
  0x38   : > { %p1394_p13 = pnand %p1393_p12, %p1518_p4  ;;  %p1399_p3 = por %p1398_p2, %p1397_p1 }
  0x3a   : > { %1184 = vmatmul.msk.f32.gmra.mxu1 %vm258_vm1, %v240_v25  ;;  %p1395_p0 = pneg %p1394_p13 }
  0x3b   : > { %1194 = vmatmul.msk.f32.gmra.mxu2 %vm258_vm1, %v398_v26 }
  0x3c   : > { %1212 = vmatmul.msk.f32.gmra.mxu3 %vm258_vm1, %v1202_v27  ;;  %p1400_p5 = pnand %p1399_p3, %p1395_p0 }
  0x3d   : > { %1230 = vmatmul.msk.f32.gmra.mxu0 %vm258_vm1, %v1220_v28 }
  0x42   : > { %1185 = vmatmul.msk.f32.gmra.mxu1 %vm258_vm1, %v241_v29 }
  0x43   : > { %1195 = vmatmul.msk.f32.gmra.mxu2 %vm258_vm1, %v399_v30 }
  0x44   : > { %1213 = vmatmul.msk.f32.gmra.mxu3 %vm258_vm1, %v1203_v31 }
  0x45   : > { %1231 = vmatmul.msk.f32.gmra.mxu0 %vm258_vm1, %v1221_v32 }
  0x4a   : > { %1186 = vmatmul.msk.f32.gmra.mxu1 %vm258_vm1, %v242_v33 }
  0x4b   : > { %1196 = vmatmul.msk.f32.gmra.mxu2 %vm258_vm1, %v400_v34 }
  0x4c   : > { %1214 = vmatmul.msk.f32.gmra.mxu3 %vm258_vm1, %v1204_v35 }
  0x4d   : > { %1232 = vmatmul.msk.f32.gmra.mxu0 %vm258_vm1, %v1222_v36 }
  0x52   : > { %1187 = vmatmul.msk.f32.gmra.mxu1 %vm258_vm1, %v243_v37 }
  0x53   : > { %1197 = vmatmul.msk.f32.gmra.mxu2 %vm258_vm1, %v401_v38 }
  0x54   : > { %1215 = vmatmul.msk.f32.gmra.mxu3 %vm258_vm1, %v1205_v39 }
  0x55   : > { %1233 = vmatmul.msk.f32.gmra.mxu0 %vm258_vm1, %v1223_v40 }
  0x5a   : > { %1188 = vmatmul.msk.f32.gmra.mxu1 %vm258_vm1, %v244_v41 }
  0x5b   : > { %1198 = vmatmul.msk.f32.gmra.mxu2 %vm258_vm1, %v402_v42 }
  0x5c   : > { %1216 = vmatmul.msk.f32.gmra.mxu3 %vm258_vm1, %v1206_v43 }
  0x5d   : > { %1234 = vmatmul.msk.f32.gmra.mxu0 %vm258_vm1, %v1224_v44 }
  0x62   : > { %1189 = vmatmul.msk.f32.gmra.mxu1 %vm258_vm1, %v245_v45 }
  0x63   : > { %1199 = vmatmul.msk.f32.gmra.mxu2 %vm258_vm1, %v403_v46 }
  0x64   : > { %1217 = vmatmul.msk.f32.gmra.mxu3 %vm258_vm1, %v1207_v47 }
  0x65   : > { %1235 = vmatmul.msk.f32.gmra.mxu0 %vm258_vm1, %v1225_v48 }
  0x6a   : > { %1246 = vmatmul.msk.f32.vlgmr.msra.gmra.mxu1 %vm258_vm1, %v1236_v49 }
  0x6b   : > { %1264 = vmatmul.msk.f32.vlgmr.msra.gmra.mxu2 %vm258_vm1, %v239_v21 }
  0x6c   : > { %1282 = vmatmul.msk.f32.vlgmr.msra.gmra.mxu3 %vm258_vm1, %v1606_v16 }
  0x6d   : > { %1300 = vmatmul.msk.f32.vlgmr.msra.gmra.mxu0 %vm258_vm1, %v397_v22 }
  0x72   : > { %1247 = vmatmul.msk.f32.gmra.mxu1 %vm258_vm1, %v1237_v50 }
  0x73   : > { %1265 = vmatmul.msk.f32.gmra.mxu2 %vm258_vm1, %v240_v25 }
  0x74   : > { %1283 = vmatmul.msk.f32.gmra.mxu3 %vm258_vm1, %v1570_v7 }
  0x75   : > { %1301 = vmatmul.msk.f32.gmra.mxu0 %vm258_vm1, %v398_v26 }
  0x7a   : > { %1248 = vmatmul.msk.f32.gmra.mxu1 %vm258_vm1, %v1238_v51 }
  0x7b   : > { %1266 = vmatmul.msk.f32.gmra.mxu2 %vm258_vm1, %v241_v29 }
  0x7c   : > { %1284 = vmatmul.msk.f32.gmra.mxu3 %vm258_vm1, %v1597_v13 }
  0x7d   : > { %1302 = vmatmul.msk.f32.gmra.mxu0 %vm258_vm1, %v399_v30 }
  0x82   : > { %1249 = vmatmul.msk.f32.gmra.mxu1 %vm258_vm1, %v1239_v52  ;;  %v1781_v52 = vld [vmem:[%s1863_s2] ss:$0 sm:$0xff] }
  0x83   : > { %1267 = vmatmul.msk.f32.gmra.mxu2 %vm258_vm1, %v242_v33 }
  0x84   : > { %1285 = vmatmul.msk.f32.gmra.mxu3 %vm258_vm1, %v1573_v8 }
  0x85   : > { %1303 = vmatmul.msk.f32.gmra.mxu0 %vm258_vm1, %v400_v34 }
  0x8a   : > { %1250 = vmatmul.msk.f32.gmra.mxu1 %vm258_vm1, %v1240_v53 }
  0x8b   : > { %1268 = vmatmul.msk.f32.gmra.mxu2 %vm258_vm1, %v243_v37 }
  0x8c   : > { %1286 = vmatmul.msk.f32.gmra.mxu3 %vm258_vm1, %v1600_v14 }
  0x8d   : > { %1304 = vmatmul.msk.f32.gmra.mxu0 %vm258_vm1, %v401_v38 }
  0x92   : > { %1251 = vmatmul.msk.f32.gmra.mxu1 %vm258_vm1, %v1241_v54 }
  0x93   : > { %1269 = vmatmul.msk.f32.gmra.mxu2 %vm258_vm1, %v244_v41 }
  0x94   : > { %1287 = vmatmul.msk.f32.gmra.mxu3 %vm258_vm1, %v1576_v9 }
  0x95   : > { %1305 = vmatmul.msk.f32.gmra.mxu0 %vm258_vm1, %v402_v42 }
  0x97   : > { %v1716_v55 = vpop.f32.mrf.mxu1 }
  0x9a   : > { %v304_v57 = vpop.f32.mrf.mxu0  ;;  %1252 = vmatmul.msk.f32.gmra.mxu1 %vm258_vm1, %v1242_v56 }
  0x9b   : > { %1270 = vmatmul.msk.f32.gmra.mxu2 %vm258_vm1, %v245_v45 }
  0x9c   : > { %1288 = vmatmul.msk.f32.gmra.mxu3 %vm258_vm1, %v1603_v15 }
  0x9d   : > { %1306 = vmatmul.msk.f32.gmra.mxu0 %vm258_vm1, %v403_v46 }
  0x9e   : > { %v1724_v58 = vpop.f32.mrf.mxu2 }
  0x9f   : > { %v1726_v59 = vpop.f32.mrf.mxu3  ;;  %v1728_v60 = vpop.f32.mrf.mxu1 }
  0xa2   : > { %v307_v0 = vpop.f32.mrf.mxu0  ;;  %1253 = vmatmul.msk.f32.gmra.mxu1 %vm258_vm1, %v1243_v61 }
  0xa3   : > { %1271 = vmatmul.msk.f32.gmra.mxu2 %vm258_vm1, %v1261_v62 }
  0xa4   : > { %1289 = vmatmul.msk.f32.gmra.mxu3 %vm258_vm1, %v1279_v63 }
  0xa5   : > { %1307 = vmatmul.msk.f32.gmra.mxu0 %vm258_vm1, %v1297_v1 }
  0xa6   : > { %v1738_v2 = vpop.f32.mrf.mxu2 }
  0xa7   : > { %v1740_v3 = vpop.f32.mrf.mxu3  ;;  %v372_v4 = vpop.f32.mrf.mxu1 }
  0xa8   : > { %v373_v33 = vadd.f32 %v372_v4, %v304_v57 }
  0xaa   : > { %v624_v5 = vpop.f32.mrf.mxu0 }
  0xae   : > { %v450_v6 = vpop.f32.mrf.mxu2 }
  0xaf   : > { %v537_v7 = vpop.f32.mrf.mxu3  ;;  %v375_v8 = vpop.f32.mrf.mxu1  ;;  %v474_v35 = vadd.f32 %v450_v6, %v373_v33 }
  0xb0   : > { %v376_v40 = vadd.f32 %v375_v8, %v307_v0 }
  0xb1   : > { %v561_v37 = vadd.f32 %v537_v7, %v474_v35 }
  0xb2   : > { %v627_v9 = vpop.f32.mrf.mxu0 }
  0xb3   : > { %v648_v42 = vadd.f32 %v624_v5, %v561_v37 }
  0xb6   : > { %v453_v10 = vpop.f32.mrf.mxu2 }
  0xb7   : > { %v540_v11 = vpop.f32.mrf.mxu3  ;;  %v378_v12 = vpop.f32.mrf.mxu1  ;;  %v475_v43 = vadd.f32 %v453_v10, %v376_v40 }
  0xb8   : > { %v379_v50 = vadd.f32 %v378_v12, %v1716_v55 }
  0xb9   : > { %v562_v46 = vadd.f32 %v540_v11, %v475_v43 }
  0xba   : > { %v630_v13 = vpop.f32.mrf.mxu0 }
  0xbb   : > { %v649_v54 = vadd.f32 %v627_v9, %v562_v46 }
  0xbe   : > { %v456_v14 = vpop.f32.mrf.mxu2 }
  0xbf   : > { %v543_v15 = vpop.f32.mrf.mxu3  ;;  %v381_v16 = vpop.f32.mrf.mxu1  ;;  %v476_v56 = vadd.f32 %v456_v14, %v379_v50 }
  0xc0   : > { %v382_v5 = vadd.f32 %v381_v16, %v1728_v60 }
  0xc1   : > { %v563_v0 = vadd.f32 %v543_v15, %v476_v56 }
  0xc2   : > { %v1742_v17 = vpop.f32.mrf.mxu0 }
  0xc3   : > { %v650_v8 = vadd.f32 %v630_v13, %v563_v0 }
  0xc6   : > { %v459_v18 = vpop.f32.mrf.mxu2 }
  0xc7   : > { %v546_v19 = vpop.f32.mrf.mxu3  ;;  %v384_v20 = vpop.f32.mrf.mxu1  ;;  %v477_v9 = vadd.f32 %v459_v18, %v382_v5 }
  0xc9   : > { %v564_v15 = vadd.f32 %v546_v19, %v477_v9 }
  0xca   : > { %v1744_v21 = vpop.f32.mrf.mxu0 }
  0xcb   : > { %v651_v60 = vadd.f32 %v1742_v17, %v564_v15 }
  0xce   : > { %v1746_v22 = vpop.f32.mrf.mxu2 }
  0xcf   : > { %v1748_v23 = vpop.f32.mrf.mxu3  ;;  %v1750_v24 = vpop.f32.mrf.mxu1 }
  0xd2   : > { %v1752_v25 = vpop.f32.mrf.mxu0 }
  0xd6   : > { %v1754_v26 = vpop.f32.mrf.mxu2 }
  0xd7   : > { %v1756_v27 = vpop.f32.mrf.mxu3  ;;  %v1758_v28 = vpop.f32.mrf.mxu1 }
  0xda   : > { %v1760_v29 = vpop.f32.mrf.mxu0 }
  0xde   : > { %v1762_v30 = vpop.f32.mrf.mxu2 }
  0xdf   : > { %v1764_v31 = vpop.f32.mrf.mxu3  ;;  %v1766_v32 = vpop.f32.mrf.mxu1 }
  0xe2   : > { %v1768_v34 = vpop.f32.mrf.mxu0 }
  0xe6   : > { %v1770_v36 = vpop.f32.mrf.mxu2 }
  0xe7   : > { %v1772_v38 = vpop.f32.mrf.mxu3  ;;  %v710_v39 = vpop.f32.mrf.mxu1 }
  0xe8   : > { %v734_v44 = vadd.f32 %v710_v39, %v648_v42  ;;  %v385_v39 = vadd.f32 %v384_v20, %v1724_v58  ;;  %v388_v58 = vadd.f32 %v1750_v24, %v1738_v2  ;;  %v391_v2 = vadd.f32 %v1758_v28, %v1726_v59 }
  0xe9   : > { %v394_v59 = vadd.f32 %v1766_v32, %v1740_v3 }
  0xea   : > { %v970_v41 = vpop.f32.mrf.mxu0  ;;  %v478_v13 = vadd.f32 %v1746_v22, %v385_v39  ;;  %v479_v22 = vadd.f32 %v1754_v26, %v388_v58  ;;  %v480_v26 = vadd.f32 %v1762_v30, %v391_v2 }
  0xeb   : > { %v481_v30 = vadd.f32 %v1770_v36, %v394_v59 }
  0xec   : > { %v565_v19 = vadd.f32 %v1748_v23, %v478_v13  ;;  %v566_v23 = vadd.f32 %v1756_v27, %v479_v22  ;;  %v567_v27 = vadd.f32 %v1764_v31, %v480_v26 }
  0xed   : > { %v568_v9 = vadd.f32 %v1772_v38, %v481_v30 }
  0xee   : > { %v797_v45 = vpop.f32.mrf.mxu2  ;;  %v652_v17 = vadd.f32 %v1744_v21, %v565_v19  ;;  %v653_v21 = vadd.f32 %v1752_v25, %v566_v23  ;;  %v654_v25 = vadd.f32 %v1760_v29, %v567_v27 }
  0xef   : > { %v821_v47 = vadd.f32 %v797_v45, %v734_v44  ;;  %v884_v48 = vpop.f32.mrf.mxu3  ;;  %v713_v49 = vpop.f32.mrf.mxu1 }
  0xf0   : > { %v735_v61 = vadd.f32 %v713_v49, %v649_v54 }
  0xf1   : > { %v908_v51 = vadd.f32 %v884_v48, %v821_v47 }
  0xf2   : > { %v973_v53 = vpop.f32.mrf.mxu0 }
  0xf3   : > { %v994_v57 = vadd.f32 %v970_v41, %v908_v51 }
  0xf5   : > { %v1006_v62 = vadd.f32 %v1781_v52, %v994_v57 }
  0xf6   : > { %v800_v63 = vpop.f32.mrf.mxu2 }
  0xf7   : > { %1014 = vst [vmem:[%s1784_s9] sm:$0xff] %v1006_v62  ;;  %v822_v55 = vadd.f32 %v800_v63, %v735_v61  ;;  %v887_v1 = vpop.f32.mrf.mxu3  ;;  %v716_v4 = vpop.f32.mrf.mxu1 }
  0xf8   : > { %v736_v11 = vadd.f32 %v716_v4, %v650_v8 }
  0xf9   : > { %v909_v6 = vadd.f32 %v887_v1, %v822_v55 }
  0xfa   : > { %v976_v7 = vpop.f32.mrf.mxu0 }
  0xfb   : > { %v995_v10 = vadd.f32 %v973_v53, %v909_v6 }
  0xfd   : > { %v1007_v12 = vadd.f32 %v1781_v52, %v995_v10 }
  0xfe   : > { %v803_v14 = vpop.f32.mrf.mxu2 }
  0xff   : > { %1015 = vst [vmem:[%s1784_s9 + $0x8] sm:$0xff] %v1007_v12  ;;  %v823_v33 = vadd.f32 %v803_v14, %v736_v11  ;;  %v890_v35 = vpop.f32.mrf.mxu3  ;;  %v719_v37 = vpop.f32.mrf.mxu1  ;;  %v655_v12 = vadd.f32 %v1768_v34, %v568_v9 }
 0x100   : > { %v737_v18 = vadd.f32 %v719_v37, %v651_v60 }
 0x101   : > { %v910_v40 = vadd.f32 %v890_v35, %v823_v33 }
 0x102   : > { %v979_v41 = vpop.f32.mrf.mxu0 }
 0x103   : > { %v996_v16 = vadd.f32 %v976_v7, %v910_v40 }
 0x105   : > { %v1008_v42 = vadd.f32 %v1781_v52, %v996_v16 }
 0x106   : > { %v806_v43 = vpop.f32.mrf.mxu2 }
 0x107   : > { %1016 = vst [vmem:[%s1784_s9 + $0x10] sm:$0xff] %v1008_v42  ;;  %v824_v44 = vadd.f32 %v806_v43, %v737_v18  ;;  %v893_v45 = vpop.f32.mrf.mxu3  ;;  %v722_v46 = vpop.f32.mrf.mxu1 }
 0x108   : > { %v738_v49 = vadd.f32 %v722_v46, %v652_v17 }
 0x109   : > { %v911_v20 = vadd.f32 %v893_v45, %v824_v44 }
 0x10a   : > { %v982_v47 = vpop.f32.mrf.mxu0 }
 0x10b   : > { %v997_v48 = vadd.f32 %v979_v41, %v911_v20 }
 0x10d   : > { %v1009_v50 = vadd.f32 %v1781_v52, %v997_v48 }
 0x10e   : > { %v809_v51 = vpop.f32.mrf.mxu2 }
 0x10f   : > { %1017 = vst [vmem:[%s1784_s9 + $0x18] sm:$0xff] %v1009_v50  ;;  %v825_v53 = vadd.f32 %v809_v51, %v738_v49  ;;  %v896_v54 = vpop.f32.mrf.mxu3  ;;  %v725_v56 = vpop.f32.mrf.mxu1 }
 0x110   : > { %v739_v62 = vadd.f32 %v725_v56, %v653_v21 }
 0x111   : > { %v912_v24 = vadd.f32 %v896_v54, %v825_v53 }
 0x112   : > { %v985_v61 = vpop.f32.mrf.mxu0 }
 0x113   : > { %v998_v57 = vadd.f32 %v982_v47, %v912_v24 }
 0x115   : > { %v1010_v63 = vadd.f32 %v1781_v52, %v998_v57 }
 0x116   : > { %v812_v0 = vpop.f32.mrf.mxu2 }
 0x117   : > { %1018 = vst [vmem:[%s1784_s9 + $0x20] sm:$0xff] %v1010_v63  ;;  %v826_v55 = vadd.f32 %v812_v0, %v739_v62  ;;  %v899_v1 = vpop.f32.mrf.mxu3  ;;  %v728_v4 = vpop.f32.mrf.mxu1 }
 0x118   : > { %v740_v6 = vadd.f32 %v728_v4, %v654_v25 }
 0x119   : > { %v913_v28 = vadd.f32 %v899_v1, %v826_v55 }
 0x11a   : > { %v988_v31 = vpop.f32.mrf.mxu0 }
 0x11b   : > { %v999_v5 = vadd.f32 %v985_v61, %v913_v28 }
 0x11d   : > { %v1011_v7 = vadd.f32 %v1781_v52, %v999_v5 }
 0x11e   : > { %v815_v8 = vpop.f32.mrf.mxu2 }
 0x11f   : > { %1019 = vst [vmem:[%s1784_s9 + $0x28] sm:$0xff] %v1011_v7  ;;  %v827_v10 = vadd.f32 %v815_v8, %v740_v6  ;;  %v902_v11 = vpop.f32.mrf.mxu3  ;;  %v731_v32 = vpop.f32.mrf.mxu1 }
 0x120   : > { %v741_v36 = vadd.f32 %v731_v32, %v655_v12 }
 0x121   : > { %v914_v3 = vadd.f32 %v902_v11, %v827_v10 }
 0x122   : > { %v991_v35 = vpop.f32.mrf.mxu0 }
 0x123   : > { %v1000_v29 = vadd.f32 %v988_v31, %v914_v3 }
 0x125   : > { %v1012_v14 = vadd.f32 %v1781_v52, %v1000_v29 }
 0x126   : > { %v818_v15 = vpop.f32.mrf.mxu2 }
 0x127   : > { %1020 = vst [vmem:[%s1784_s9 + $0x30] sm:$0xff] %v1012_v14  ;;  %v828_v38 = vadd.f32 %v818_v15, %v741_v36  ;;  %v905_v33 = vpop.f32.mrf.mxu3 }
 0x129   : > { %v915_v37 = vadd.f32 %v905_v33, %v828_v38 }
 0x12b   : > { %v1001_v34 = vadd.f32 %v991_v35, %v915_v37 }
 0x12d   : > { %v1013_v39 = vadd.f32 %v1781_v52, %v1001_v34 }
 0x12f   : > { %1021 = vst [vmem:[%s1784_s9 + $0x38] sm:$0xff] %v1013_v39 }
 0x130   : > { %1403 = shalt.err (!%p1400_p5)
}
 0x131   : > { %s1456_s5 = smov 128   ;;  %s1457_s7 = smov 8  }
 0x132   : > { %1318 = dma.vmem_to_hbm [thread:$0]  (%p1518_p4), %s1039_s21, 1024, %s1041_s23, %s1023_s15, %s1456_s5, %s1456_s5, %s1457_s7  }
 0x133 PF: > { %p1324_p6 = scmp.ge.s32.totalorder %s1454_s17, 2  ;;  %s1055_s8 = sand.u32 1, %s1434_s12  }
 0x134   : > { %s1056_s9 = scalar_lea.sflag [#allocation3], %s1055_s8 }
 0x135   : > { %p1321_p7 = pnand %p1324_p6, %p1525_p8 }
 0x137   : > { %p1322_p9 = pneg %p1321_p7 }
 0x139   : > { %1429 = dma.done.wait (%p1322_p9), %s1056_s9, 1024  }
 0x13a   : > { %1431 = vsyncadd (%p1322_p9), %s1056_s9, 4294966272  ;;  %s16_s17 = sadd.s32 1, %s1454_s17   ;;  %s1867_s12 = smov %s1438_s13 }
 0x13b   : > { %p13_p10 = scmp.ge.s32.totalorder %s16_s17, 4   ;;  %s1868_s13 = smov %s1442_s14 }
 0x13c   : > { %s1869_s14 = smov %s1531_s25  ;;  %s1870_s15 = smov %s1450_s16 }
 0x13d   : > { %s1871_s16 = smov %s1873_s20  ;;  %15 = sbr.rel (!%p13_p10) target bundleno = 4 (0x4), region = 86 }
 0x142   :  { %1062 = vsyncpa [#allocation3], 1 }
 0x143   :  { %1064 = vsyncpa [#allocation3 + $0x1], 1 }

</bundles_post_ra>
